<compile_context>
chip_gen: v5e
topology: v5e:2x2
jax: 0.10.0
libtpu: 0.0.40
codegen_flags: <defaults>
</compile_context>

<pallas_src>
import jax
import jax.numpy as jnp
from jax import lax
from jax.experimental import pallas as pl
from jax.experimental.pallas import tpu as pltpu

HIDDEN = 64
LN_EPS = 1e-5


def _round_up(x, m):
    return ((x + m - 1) // m) * m


def _mlp_kernel(x_ref, w1_ref, b1_ref, g_ref, beta_ref,
                w2_ref, b2_ref, w3_ref, b3_ref, o_ref):
    # obs tile (TB, in_dim): f32 in HBM/VMEM, bf16 on the MXU, f32 accumulate.
    x = x_ref[...].astype(jnp.bfloat16)

    # layer1: Linear(in_dim, 64)
    h1 = jnp.dot(x, w1_ref[...], preferred_element_type=jnp.float32) + b1_ref[...]

    # ln1: LayerNorm(64) — mean and E[x^2] from the same pass over h1
    # (one fewer XLU reduction than the centered-variance form), gamma folded
    # into the rsqrt factor so normalization costs a single multiply.
    mean = jnp.mean(h1, axis=-1, keepdims=True)
    mean_sq = jnp.mean(h1 * h1, axis=-1, keepdims=True)
    var = jnp.maximum(mean_sq - mean * mean, 0.0)
    scale = lax.rsqrt(var + LN_EPS) * g_ref[...]
    a1 = jnp.tanh((h1 - mean) * scale + beta_ref[...])
    # TODO(synk): on v6e/v7x the two tanh passes could run in bf16 on the EUP
    # (~2x EUP throughput); kept f32 so the same kernel stays exact on v5e.

    # layer2: Linear(64, 64) + tanh
    h2 = jnp.dot(a1.astype(jnp.bfloat16), w2_ref[...],
                 preferred_element_type=jnp.float32) + b2_ref[...]
    a2 = jnp.tanh(h2)

    # layer3: Linear(64, out_dim)
    # TODO(synk): out_dim < 128 lanes -> masked vst.msk partial stores; if the
    # store slot ever saturates, present a lane-dense (TB*out_dim/128, 128)
    # output slab and reshape in the wrapper instead of zero-padding out_dim
    # (padding to 128 would only inflate HBM writeback bytes, not cut stores).
    o_ref[...] = (jnp.dot(a2.astype(jnp.bfloat16), w3_ref[...],
                          preferred_element_type=jnp.float32)
                  + b3_ref[...]).astype(o_ref.dtype)


def feedforward_nn(obs, params, *, block_rows=2048):
    """Forward pass.

    obs: (B, in_dim) or (in_dim,) float array. params: dict of f32 tensors,
    Linear weights pre-transposed to (fan_in, fan_out). The batch is tiled
    into TB-row blocks that pipeline through VMEM while the (tiny) weights
    stay resident.
    """
    obs = jnp.asarray(obs, jnp.float32)
    squeeze = obs.ndim == 1
    if squeeze:                      # single observation (common in PPO act())
        obs = obs[None, :]
    B, in_dim = obs.shape
    out_dim = params["w3"].shape[1]

    # Row tile: multiple of 8 (f32 sublane); pad B so the grid divides evenly
    # (cheap, correct handling of ragged batches — padded rows sliced off).
    TB = min(block_rows, _round_up(B, 8))
    B_pad = _round_up(B, TB)
    if B_pad != B:
        obs = jnp.pad(obs, ((0, B_pad - B), (0, 0)))

    # bf16 weights for the MXU (cast once, outside the grid); biases / LN
    # params stay f32 and are added into the f32 accumulator.
    w1 = params["w1"].astype(jnp.bfloat16)
    w2 = params["w2"].astype(jnp.bfloat16)
    w3 = params["w3"].astype(jnp.bfloat16)

    def resident(shape):  # full-shape block, same tile every grid step
        return pl.BlockSpec(shape, lambda i: (0, 0))

    out = pl.pallas_call(
        _mlp_kernel,
        out_shape=jax.ShapeDtypeStruct((B_pad, out_dim), jnp.float32),
        grid_spec=pltpu.PrefetchScalarGridSpec(
            num_scalar_prefetch=0,
            grid=(B_pad // TB,),
            in_specs=[
                pl.BlockSpec((TB, in_dim), lambda i: (i, 0)),   # obs tile
                resident((in_dim, HIDDEN)),                     # w1
                resident((1, HIDDEN)),                          # b1
                resident((1, HIDDEN)),                          # ln gamma
                resident((1, HIDDEN)),                          # ln beta
                resident((HIDDEN, HIDDEN)),                     # w2
                resident((1, HIDDEN)),                          # b2
                resident((HIDDEN, out_dim)),                    # w3
                resident((1, out_dim)),                         # b3
            ],
            out_specs=pl.BlockSpec((TB, out_dim), lambda i: (i, 0)),
        ),
        compiler_params=pltpu.CompilerParams(
            # Batch tiles are independent -> shard grid steps across both
            # TensorCores on v7x (no-op on single-TC v5e/v6e).
            dimension_semantics=("parallel",),
            # Allow bigger row tiles than the default scoped limit
            # (16 MiB v5e / 32 MiB v6e+), stay under v7x's 64 MiB physical.
            vmem_limit_bytes=48 * 1024 * 1024,
        ),
    )(obs, w1, params["b1"], params["ln_g"], params["ln_b"],
      w2, params["b2"], w3, params["b3"])

    if B_pad != B:
        out = out[:B]
    return out[0] if squeeze else out


def init_params(key, in_dim, out_dim):
    """Deterministic init mirroring the module's __init__:
    weights ~ N(0, 0.1); biases ~ U(-1/sqrt(fan_in), 1/sqrt(fan_in));
    LayerNorm gamma=1, beta=0. Weights stored as (fan_in, fan_out) f32."""
    ks = jax.random.split(key, 6)

    def bias(k, fan_in, n):
        bound = 1.0 / jnp.sqrt(fan_in)
        return jax.random.uniform(k, (1, n), jnp.float32, -bound, bound)

    return {
        "w1": 0.1 * jax.random.normal(ks[0], (in_dim, HIDDEN), jnp.float32),
        "b1": bias(ks[1], in_dim, HIDDEN),
        "ln_g": jnp.ones((1, HIDDEN), jnp.float32),
        "ln_b": jnp.zeros((1, HIDDEN), jnp.float32),
        "w2": 0.1 * jax.random.normal(ks[2], (HIDDEN, HIDDEN), jnp.float32),
        "b2": bias(ks[3], HIDDEN, HIDDEN),
        "w3": 0.1 * jax.random.normal(ks[4], (HIDDEN, out_dim), jnp.float32),
        "b3": bias(ks[5], HIDDEN, out_dim),
    }


def _reference(obs, p):
    h1 = obs @ p["w1"] + p["b1"]
    mean = jnp.mean(h1, axis=-1, keepdims=True)
    var = jnp.mean((h1 - mean) ** 2, axis=-1, keepdims=True)
    a1 = jnp.tanh((h1 - mean) / jnp.sqrt(var + LN_EPS) * p["ln_g"] + p["ln_b"])
    a2 = jnp.tanh(a1 @ p["w2"] + p["b2"])
    return a2 @ p["w3"] + p["b3"]


if __name__ == "__main__":
    key = jax.random.PRNGKey(0)
    k_obs, k_par = jax.random.split(key)

    B, IN_DIM, OUT_DIM = 20, 32, 8   # B not a multiple of the tile -> exercises padding
    obs = jax.random.normal(k_obs, (B, IN_DIM), jnp.float32)
    params = init_params(k_par, IN_DIM, OUT_DIM)

    # block_rows=8 keeps the demo tiny while still exercising a multi-step
    # pipelined grid: 20 rows pad to 24 -> grid=(3,) tiles of 8 rows.
    out = feedforward_nn(obs, params, block_rows=8)
    out = jax.block_until_ready(out)

    ref = _reference(obs, params)
    assert out.shape == (B, OUT_DIM)
    # bf16 MXU operands (f32 accumulation) -> looser tolerance than pure f32.
    assert jnp.allclose(out, ref, atol=2e-2, rtol=2e-2), \
        float(jnp.max(jnp.abs(out - ref)))

    # Single-observation path (1-D obs, as PPO's actor typically calls it).
    out1 = jax.block_until_ready(feedforward_nn(obs[0], params, block_rows=8))
    assert out1.shape == (OUT_DIM,)
    assert jnp.allclose(out1, ref[0], atol=2e-2, rtol=2e-2)

    print("KERNEL_OK")
</pallas_src>

<mosaic_0001>
module attributes {stable_mosaic.version = 11 : i64} {
  func.func @_mlp_kernel(%arg0: i32, %arg1: memref<8x32xf32, #tpu.memory_space<vmem>>, %arg2: memref<32x64xbf16, #tpu.memory_space<vmem>>, %arg3: memref<1x64xf32, #tpu.memory_space<vmem>>, %arg4: memref<1x64xf32, #tpu.memory_space<vmem>>, %arg5: memref<1x64xf32, #tpu.memory_space<vmem>>, %arg6: memref<64x64xbf16, #tpu.memory_space<vmem>>, %arg7: memref<1x64xf32, #tpu.memory_space<vmem>>, %arg8: memref<64x8xbf16, #tpu.memory_space<vmem>>, %arg9: memref<1x8xf32, #tpu.memory_space<vmem>>, %arg10: memref<8x8xf32, #tpu.memory_space<vmem>>) attributes {dimension_semantics = [#tpu.dimension_semantics<parallel>], iteration_bounds = array<i64: 3>, scalar_prefetch = 0 : i64, scratch_operands = 0 : i64, tpu.core_type = #tpu.core_type<tc>, window_params = [{transform_indices = @transform_0, window_bounds = array<i64: 8, 32>}, {pipeline_mode = #tpu.pipeline_mode<synchronous>, transform_indices = @transform_1, window_bounds = array<i64: 32, 64>}, {pipeline_mode = #tpu.pipeline_mode<synchronous>, transform_indices = @transform_2, window_bounds = array<i64: 1, 64>}, {pipeline_mode = #tpu.pipeline_mode<synchronous>, transform_indices = @transform_3, window_bounds = array<i64: 1, 64>}, {pipeline_mode = #tpu.pipeline_mode<synchronous>, transform_indices = @transform_4, window_bounds = array<i64: 1, 64>}, {pipeline_mode = #tpu.pipeline_mode<synchronous>, transform_indices = @transform_5, window_bounds = array<i64: 64, 64>}, {pipeline_mode = #tpu.pipeline_mode<synchronous>, transform_indices = @transform_6, window_bounds = array<i64: 1, 64>}, {pipeline_mode = #tpu.pipeline_mode<synchronous>, transform_indices = @transform_7, window_bounds = array<i64: 64, 8>}, {pipeline_mode = #tpu.pipeline_mode<synchronous>, transform_indices = @transform_8, window_bounds = array<i64: 1, 8>}, {transform_indices = @transform_9, window_bounds = array<i64: 8, 8>}]} {
    %c0 = arith.constant 0 : index
    %c0_0 = arith.constant 0 : index
    %0 = vector.load %arg1[%c0, %c0_0] : memref<8x32xf32, #tpu.memory_space<vmem>>, vector<8x32xf32>
    %1 = arith.truncf %0 : vector<8x32xf32> to vector<8x32xbf16>
    %c0_1 = arith.constant 0 : index
    %c0_2 = arith.constant 0 : index
    %2 = vector.load %arg2[%c0_1, %c0_2] : memref<32x64xbf16, #tpu.memory_space<vmem>>, vector<32x64xbf16>
    %cst = arith.constant dense<0.000000e+00> : vector<8x64xf32>
    %3 = tpu.matmul %1, %2, %cst {dimension_numbers = #tpu.dot_dimension_numbers<[1], [0], [0], [1], [0, 0, 1, 1], [], []>} : vector<8x32xbf16>, vector<32x64xbf16>, vector<8x64xf32> -> vector<8x64xf32>
    %c0_3 = arith.constant 0 : index
    %c0_4 = arith.constant 0 : index
    %4 = vector.load %arg3[%c0_3, %c0_4] : memref<1x64xf32, #tpu.memory_space<vmem>>, vector<1x64xf32>
    %5 = vector.broadcast %4 : vector<1x64xf32> to vector<8x64xf32>
    %6 = arith.addf %3, %5 : vector<8x64xf32>
    %cst_5 = arith.constant dense<0.000000e+00> : vector<8xf32>
    %7 = vector.multi_reduction <add>, %6, %cst_5 [1] : vector<8x64xf32> to vector<8xf32>
    %8 = vector.shape_cast %7 : vector<8xf32> to vector<8x1xf32>
    %cst_6 = arith.constant 6.400000e+01 : f32
    %9 = vector.broadcast %cst_6 : f32 to vector<8x1xf32>
    %10 = arith.divf %8, %9 : vector<8x1xf32>
    %11 = arith.mulf %6, %6 : vector<8x64xf32>
    %cst_7 = arith.constant dense<0.000000e+00> : vector<8xf32>
    %12 = vector.multi_reduction <add>, %11, %cst_7 [1] : vector<8x64xf32> to vector<8xf32>
    %13 = vector.shape_cast %12 : vector<8xf32> to vector<8x1xf32>
    %cst_8 = arith.constant 6.400000e+01 : f32
    %14 = vector.broadcast %cst_8 : f32 to vector<8x1xf32>
    %15 = arith.divf %13, %14 : vector<8x1xf32>
    %16 = arith.mulf %10, %10 : vector<8x1xf32>
    %17 = arith.subf %15, %16 : vector<8x1xf32>
    %cst_9 = arith.constant 0.000000e+00 : f32
    %18 = vector.broadcast %cst_9 : f32 to vector<8x1xf32>
    %19 = arith.maximumf %17, %18 : vector<8x1xf32>
    %cst_10 = arith.constant 9.99999974E-6 : f32
    %20 = vector.broadcast %cst_10 : f32 to vector<8x1xf32>
    %21 = arith.addf %19, %20 : vector<8x1xf32>
    %22 = math.rsqrt %21 : vector<8x1xf32>
    %c0_11 = arith.constant 0 : index
    %c0_12 = arith.constant 0 : index
    %23 = vector.load %arg4[%c0_11, %c0_12] : memref<1x64xf32, #tpu.memory_space<vmem>>, vector<1x64xf32>
    %24 = vector.broadcast %22 : vector<8x1xf32> to vector<8x64xf32>
    %25 = vector.broadcast %23 : vector<1x64xf32> to vector<8x64xf32>
    %26 = arith.mulf %24, %25 : vector<8x64xf32>
    %27 = vector.broadcast %10 : vector<8x1xf32> to vector<8x64xf32>
    %28 = arith.subf %6, %27 : vector<8x64xf32>
    %29 = arith.mulf %28, %26 : vector<8x64xf32>
    %c0_13 = arith.constant 0 : index
    %c0_14 = arith.constant 0 : index
    %30 = vector.load %arg5[%c0_13, %c0_14] : memref<1x64xf32, #tpu.memory_space<vmem>>, vector<1x64xf32>
    %31 = vector.broadcast %30 : vector<1x64xf32> to vector<8x64xf32>
    %32 = arith.addf %29, %31 : vector<8x64xf32>
    %33 = math.tanh %32 : vector<8x64xf32>
    %34 = arith.truncf %33 : vector<8x64xf32> to vector<8x64xbf16>
    %c0_15 = arith.constant 0 : index
    %c0_16 = arith.constant 0 : index
    %35 = vector.load %arg6[%c0_15, %c0_16] : memref<64x64xbf16, #tpu.memory_space<vmem>>, vector<64x64xbf16>
    %cst_17 = arith.constant dense<0.000000e+00> : vector<8x64xf32>
    %36 = tpu.matmul %34, %35, %cst_17 {dimension_numbers = #tpu.dot_dimension_numbers<[1], [0], [0], [1], [0, 0, 1, 1], [], []>} : vector<8x64xbf16>, vector<64x64xbf16>, vector<8x64xf32> -> vector<8x64xf32>
    %c0_18 = arith.constant 0 : index
    %c0_19 = arith.constant 0 : index
    %37 = vector.load %arg7[%c0_18, %c0_19] : memref<1x64xf32, #tpu.memory_space<vmem>>, vector<1x64xf32>
    %38 = vector.broadcast %37 : vector<1x64xf32> to vector<8x64xf32>
    %39 = arith.addf %36, %38 : vector<8x64xf32>
    %40 = math.tanh %39 : vector<8x64xf32>
    %41 = arith.truncf %40 : vector<8x64xf32> to vector<8x64xbf16>
    %c0_20 = arith.constant 0 : index
    %c0_21 = arith.constant 0 : index
    %42 = vector.load %arg8[%c0_20, %c0_21] : memref<64x8xbf16, #tpu.memory_space<vmem>>, vector<64x8xbf16>
    %cst_22 = arith.constant dense<0.000000e+00> : vector<8x8xf32>
    %43 = tpu.matmul %41, %42, %cst_22 {dimension_numbers = #tpu.dot_dimension_numbers<[1], [0], [0], [1], [0, 0, 1, 1], [], []>} : vector<8x64xbf16>, vector<64x8xbf16>, vector<8x8xf32> -> vector<8x8xf32>
    %c0_23 = arith.constant 0 : index
    %c0_24 = arith.constant 0 : index
    %44 = vector.load %arg9[%c0_23, %c0_24] : memref<1x8xf32, #tpu.memory_space<vmem>>, vector<1x8xf32>
    %45 = vector.broadcast %44 : vector<1x8xf32> to vector<8x8xf32>
    %46 = arith.addf %43, %45 : vector<8x8xf32>
    %c0_25 = arith.constant 0 : index
    %c0_26 = arith.constant 0 : index
    %47 = vector.load %arg10[%c0_25, %c0_26] : memref<8x8xf32, #tpu.memory_space<vmem>>, vector<8x8xf32>
    tpu.vector_store %arg10[%c0_25, %c0_26], %46 {strides = array<i32>} : memref<8x8xf32, #tpu.memory_space<vmem>>, vector<8x8xf32>,
    return
  }
  func.func @transform_0(%arg0: i32) -> (i32, i32) {
    %c0_i32 = arith.constant 0 : i32
    %c0_i32_0 = arith.constant 0 : i32
    return %arg0, %c0_i32 : i32, i32
  }
  func.func @transform_1(%arg0: i32) -> (i32, i32) {
    %c0_i32 = arith.constant 0 : i32
    %c0_i32_0 = arith.constant 0 : i32
    %c0_i32_1 = arith.constant 0 : i32
    return %c0_i32, %c0_i32_0 : i32, i32
  }
  func.func @transform_2(%arg0: i32) -> (i32, i32) {
    %c0_i32 = arith.constant 0 : i32
    %c0_i32_0 = arith.constant 0 : i32
    %c0_i32_1 = arith.constant 0 : i32
    return %c0_i32, %c0_i32_0 : i32, i32
  }
  func.func @transform_3(%arg0: i32) -> (i32, i32) {
    %c0_i32 = arith.constant 0 : i32
    %c0_i32_0 = arith.constant 0 : i32
    %c0_i32_1 = arith.constant 0 : i32
    return %c0_i32, %c0_i32_0 : i32, i32
  }
  func.func @transform_4(%arg0: i32) -> (i32, i32) {
    %c0_i32 = arith.constant 0 : i32
    %c0_i32_0 = arith.constant 0 : i32
    %c0_i32_1 = arith.constant 0 : i32
    return %c0_i32, %c0_i32_0 : i32, i32
  }
  func.func @transform_5(%arg0: i32) -> (i32, i32) {
    %c0_i32 = arith.constant 0 : i32
    %c0_i32_0 = arith.constant 0 : i32
    %c0_i32_1 = arith.constant 0 : i32
    return %c0_i32, %c0_i32_0 : i32, i32
  }
  func.func @transform_6(%arg0: i32) -> (i32, i32) {
    %c0_i32 = arith.constant 0 : i32
    %c0_i32_0 = arith.constant 0 : i32
    %c0_i32_1 = arith.constant 0 : i32
    return %c0_i32, %c0_i32_0 : i32, i32
  }
  func.func @transform_7(%arg0: i32) -> (i32, i32) {
    %c0_i32 = arith.constant 0 : i32
    %c0_i32_0 = arith.constant 0 : i32
    %c0_i32_1 = arith.constant 0 : i32
    return %c0_i32, %c0_i32_0 : i32, i32
  }
  func.func @transform_8(%arg0: i32) -> (i32, i32) {
    %c0_i32 = arith.constant 0 : i32
    %c0_i32_0 = arith.constant 0 : i32
    %c0_i32_1 = arith.constant 0 : i32
    return %c0_i32, %c0_i32_0 : i32, i32
  }
  func.func @transform_9(%arg0: i32) -> (i32, i32) {
    %c0_i32 = arith.constant 0 : i32
    %c0_i32_0 = arith.constant 0 : i32
    return %arg0, %c0_i32 : i32, i32
  }
}

</mosaic_0001>

<bundles_post_ra>
// kernel: tpu_custom_call.1
= control target key start
LH: loop header
LB: loop body
LE: loop exit
PB: predicated region body
PF: predicated region fallthrough
CT: control target
= control target key end

     0   :  { %14 = vsyncpa [#allocation3], 0  ;;  %s1066_s0 = inlined_call_operand.hbm [shape: f32[24,32], index: 0, kind: input, shape index: {}]   ;;  %s1067_s1 = inlined_call_operand.hbm [shape: bf16[32,64], index: 1, kind: input, shape index: {}]   ;;  %s1068_s2 = inlined_call_operand.vmem [shape: f32[1,64], index: 2, kind: input, shape index: {}]   ;;  %s1069_s3 = inlined_call_operand.vmem [shape: f32[1,64], index: 3, kind: input, shape index: {}]   ;;  %s1070_s4 = inlined_call_operand.vmem [shape: f32[1,64], index: 4, kind: input, shape index: {}]   ;;  %s1071_s5 = inlined_call_operand.vmem [shape: bf16[64,64], index: 5, kind: input, shape index: {}]   ;;  %s1072_s6 = inlined_call_operand.vmem [shape: f32[1,64], index: 6, kind: input, shape index: {}]   ;;  %s1073_s7 = inlined_call_operand.vmem [shape: bf16[64,8], index: 7, kind: input, shape index: {}]   ;;  %s1074_s8 = inlined_call_operand.vmem [shape: f32[1,8], index: 8, kind: input, shape index: {}]   ;;  %s1075_s9 = inlined_call_operand.vmem [shape: f32[24,8], index: 9, kind: output, shape index: {}]  }
   0x1   :  { %16 = vsyncpa [#allocation3 + $0x1], 0 }
   0x2   :  { %17 = vsyncpa [#allocation5], 0  ;;  %s920_s30 = smov 0   ;;  %s922_s10 = smov 0  }
   0x3   :  { %s924_s11 = smov 0   ;;  %s926_s12 = smov 0  }
   0x4 LB: > { %s259_s15 = sshll.u32 %s1067_s1, 4  ;;  %s942_s16 = sadd.s32 4294967295, %s864_s12   ;;  %s864_s12 = sphi %s926_s12, %s1082_s12   ;;  %s860_s11 = sphi %s924_s11, %s1081_s11   ;;  %s856_s10 = sphi %s922_s10, %s1080_s10   ;;  %s852_s30 = sphi %s920_s30, %s1079_s30   ;;  %s260_s15 = int_to_ptr.hbm [resolvable:$true] %s259_s15 }
   0x5   : > { %p636_p0 = scmp.ge.s32.totalorder %s864_s12, 1  ;;  %p44_p1 = scmp.eq.s32.totalorder %s942_s16, 0 }
   0x6   : > { %p248_p2 = scmp.lt.s32.totalorder %s864_s12, 4  ;;  %s866_s18 = smov [#allocation4]  }
   0x7   : > { %s261_s19 = sshll.u32 %s866_s18, 4  ;;  %s867_s20 = smov 64   ;;  %s262_s19 = int_to_ptr.vmem [resolvable:$true] %s261_s19 }
   0x8   : > { %p947_p3 = pnand %p636_p0, %p248_p2  ;;  %s868_s21 = smov 4  }
   0x9   : > { %s956_s22 = sadd.s32 1, %s864_s12   ;;  %s30_s24 = sadd.s32 1, %s860_s11 }
   0xa   : > { %p706_p4 = pneg %p947_p3  ;;  %s27_s23 = ssub.s32 %s864_s12, %s956_s22 }
   0xb   : > { %p28_p6 = scmp.eq.s32.totalorder %s27_s23, 0  ;;  %p37_p7 = scmp.ne.s32.totalorder %s860_s11, %s856_s10 }
   0xc   : > { %p707_p5 = pnand %p706_p4, %p44_p1  ;;  %p38_p8 = scmp.eq.s32.totalorder %s864_s12, 0 }
   0xd   : > { %p43_p9 = scmp.ne.s32.totalorder %s856_s10, %s852_s30  ;;  %p715_p12 = scmp.lt.s32.totalorder %s864_s12, 3 }
   0xe   : > { %709 = dma.hbm_to_vmem [thread:$0]  (!%p707_p5), %s260_s15, 256, %s262_s19, [#allocation5], %s867_s20, %s867_s20, %s868_s21  }
   0xf   : > { %s966_s25 = scalar_select %p28_p6, %s860_s11, %s30_s24  }
  0x10   : > { %p39_p10 = por %p38_p8, %p37_p7  ;;  %p970_p11 = por %p44_p1, %p43_p9 }
  0x11   : > { %s296_s27 = sand.u32 1, %s860_s11   ;;  %s640_s29 = sshll.u32 %s864_s12, 3 }
  0x12   : > { %s639_s28 = sshll.u32 %s296_s27, 3  ;;  %s304_s15 = scalar_lea.hbm %s1066_s0, %s640_s29 }
  0x13   : > { %s300_s18 = scalar_lea.vmem [#allocation2], %s639_s28  ;;  %s306_s20 = sshll.u32 %s304_s15, 4  ;;  %s307_s20 = int_to_ptr.hbm [resolvable:$true] %s306_s20 }
  0x14   : > { %s308_s19 = sshll.u32 %s300_s18, 4  ;;  %p980_p13 = pnand %p715_p12, %p39_p10  ;;  %s309_s19 = int_to_ptr.vmem [resolvable:$true] %s308_s19 }
  0x15   : > { %s297_s21 = scalar_lea.sflag [#allocation3], %s296_s27  ;;  %s796_s23 = sshra.s32 %s307_s20, 4  ;;  %s797_s23 = int_to_ptr.hbm [resolvable:$true] %s796_s23 }
  0x16   : > { %s798_s24 = scalar_lea.hbm %s797_s23, 8  ;;  %p800_p2 = pneg %p980_p13 }
  0x17   : > { %p799_p0 = scmp.ne.s32.totalorder %s797_s23, %s798_s24  ;;  %s803_s29 = scalar_lea.hbm %s1066_s0, 24 }
  0x18   : > { %p804_p6 = scmp.lt.s32.totalorder %s797_s23, %s1066_s0  ;;  %p805_p7 = scmp.lt.s32.totalorder %s803_s29, %s798_s24 }
  0x19   : > { %p801_p4 = pnand %p800_p2, %p799_p0 }
  0x1a   : > { %p806_p8 = por %p805_p7, %p804_p6 }
  0x1b   : > { %p802_p5 = pneg %p801_p4 }
  0x1d   : > { %p807_p9 = pnand %p806_p8, %p802_p5 }
  0x1f   : > { %810 = shalt.err (!%p807_p9)
}
  0x20   : > { %713 = dma.hbm_to_vmem [thread:$0]  (!%p980_p13), %s307_s20, 128, %s309_s19, %s297_s21  }
  0x21   : > { %317 = sbr.rel (%p947_p3) target bundleno = 620 (0x26c), region = 56  ;;  %s319_s27 = sand.u32 (!%p947_p3), 1, %s856_s10  }
  0x22   : > { %s642_s15 = sshll.u32 (!%p947_p3), %s319_s27, 3  ;;  %s320_s18 = scalar_lea.sflag (!%p947_p3), [#allocation3], %s319_s27 }
  0x23   : > { %s323_s12 = scalar_lea.vmem (!%p947_p3), [#allocation2], %s642_s15 }
  0x26   : > { %843 = dma.done.wait (%p970_p11), %s320_s18, 128  }
  0x27   : > { %845 = vsyncadd (%p970_p11), %s320_s18, 4294967168 }
  0x28   : > { %847 = dma.done.wait (%p44_p1), [#allocation5], 256  }
  0x29   : > { %849 = vsyncadd (%p44_p1), [#allocation5], 4294967040  ;;  %v691_v0 = vld [vmem:[#allocation4 + $0x8] sm:$0xff]  ;;  %v690_v1 = vld [vmem:[#allocation4] sm:$0xff]  ;;  %vm390_vm0 = vcmask 261120   ;;  %vm407_vm1 = vcmask 523264  }
  0x2a   : > { %v368_v2 = vld [vmem:[%s323_s12] sm:$0xff]  ;;  %400 = vmatpush.bf16.msra.mxu0 %v691_v0  ;;  %v869_v11 = vmov 64.0   ;;  %v695_v18 = vld [vmem:[%s1071_s5 + $0x18] sm:$0xff]  ;;  %v694_v20 = vld [vmem:[%s1071_s5 + $0x10] sm:$0xff]  ;;  %p363_p1 = scmp.lt.s32.totalorder %s942_s16, 2  ;;  %vm558_vm6 = vcmask 64512  }
  0x2b   : > { %v369_v3 = vpack.c.bf16 %v368_v2, %v368_v2  ;;  %v753_v4 = vld [vmem:[%s1068_s2] ss:$0 sm:$0xff]  ;;  %758 = vrcp.f32 %v869_v11  ;;  %495 = vmatpush.bf16.msra.mxu1 %v695_v18  ;;  %v693_v22 = vld [vmem:[%s1071_s5 + $0x8] sm:$0xff]  ;;  %v699_v30 = vld [vmem:[%s1073_s7 + $0x18] sm:$0xff] }
  0x2c   : > { %v692_v26 = vld [vmem:[%s1071_s5] sm:$0xff]  ;;  %549 = vmatpush.bf16.msra.mxu2 %v699_v30  ;;  %v698_v46 = vld [vmem:[%s1073_s7 + $0x10] sm:$0xff]  ;;  %v697_v47 = vld [vmem:[%s1073_s7 + $0x8] sm:$0xff]  ;;  %s1084_s16 = smov (!%p363_p1, %s942_s16), 2 }
  0x2d   : > { %v754_v36 = vld [vmem:[%s1069_s3] ss:$0 sm:$0xff]  ;;  %s644_s28 = sshll.u32 %s1084_s16, 3 }
  0x2e   : > { %401 = vmatpush.bf16.msra.mxu0 %v690_v1  ;;  %v755_v41 = vld [vmem:[%s1070_s4] ss:$0 sm:$0xff]  ;;  %s366_s15 = scalar_lea.vmem %s1075_s9, %s644_s28 }
  0x2f   : > { %496 = vmatpush.bf16.msra.mxu1 %v694_v20  ;;  %v696_v48 = vld [vmem:[%s1073_s7] sm:$0xff] }
  0x30   : > { %550 = vmatpush.bf16.msra.mxu2 %v698_v46  ;;  %v756_v49 = vld [vmem:[%s1072_s6] ss:$0 sm:$0xff] }
  0x31   : > { %653 = vmatmul.msk.bf16.vlgmr.msra.gmra.mxu0 %vm390_vm0, %v369_v3  ;;  %v759_v12 = vpop.eup %758  ;;  %v757_v55 = vld [vmem:[%s1074_s8] ss:$0 sm:$0xff] }
  0x32   : > { %v412_v13 = vmul.f32 64.0, %v759_v12  ;;  %vm416_vm2 = vweird.f32 %v759_v12 }
  0x33   : > { %497 = vmatpush.bf16.msra.mxu1 %v693_v22 }
  0x34   : > { %v413_v14 = vsub.f32 1.0, %v412_v13  ;;  %551 = vmatpush.bf16.msra.mxu2 %v697_v47 }
  0x36   : > { %v414_v15 = vmul.f32 %v759_v12, %v413_v14 }
  0x37   : > { %498 = vmatpush.bf16.msra.mxu1 %v692_v26 }
  0x38   : > { %v415_v16 = vadd.f32 %v759_v12, %v414_v15  ;;  %552 = vmatpush.bf16.msra.mxu2 %v696_v48 }
  0x3a   : > { %v417_v19 = vsel %vm416_vm2, %v759_v12, %v415_v16 }
  0xae   : > { %v403_v5 = vpop.f32.mrf.mxu0 }
  0xaf   : > { %v404_v6 = vadd.f32 %v753_v4, %v403_v5 }
  0xb1   : > { %v408_v7 = vsel %vm407_vm1, %v404_v6, 0.0  ;;  %v419_v8 = vmul.f32 %v404_v6, %v404_v6 }
  0xb2   : > { %409 = vadd.xlane.f32.xlu0 %v408_v7 }
  0xb3   : > { %v420_v10 = vsel %vm407_vm1, %v419_v8, 0.0 }
  0xb6   : > { %v405_v9 = vpop.f32.mrf.mxu0 }
  0xba   : > { %421 = vadd.xlane.f32.xlu0 %v420_v10 }
 0x125   : > { %v410_v17 = vpop.xlane.xlu0 %409 }
 0x126   : > { %v418_v21 = vmul.f32 %v417_v19, %v410_v17 }
 0x128   : > { %v424_v24 = vmul.f32 %v418_v21, %v418_v21  ;;  %v443_v39 = vsub.f32 %v404_v6, %v418_v21 }
 0x12d   : > { %v422_v23 = vpop.xlane.xlu0 %421 }
 0x12e   : > { %v423_v25 = vmul.f32 %v422_v23, %v417_v19 }
 0x130   : > { %v425_v27 = vsub.f32 %v423_v25, %v424_v24 }
 0x132   : > { %v426_v28 = vmax.f32 %v425_v27, 0.0 }
 0x134   : > { %v427_v29 = vadd.f32 1e-05, %v426_v28 }
 0x136   : > { %760 = vrsqrt.f32 %v427_v29  ;;  %vm434_vm4 = vweird.f32 %v427_v29 }
 0x13c   : > { %v761_v31 = vpop.eup %760 }
 0x13d   : > { %v429_v32 = vmul.f32 %v761_v31, %v427_v29  ;;  %vm435_vm3 = vweird.f32 %v761_v31 }
 0x13e   : > { %vm436_vm5 = vmor %vm434_vm4, %vm435_vm3 }
 0x13f   : > { %v430_v33 = vmul.f32 %v761_v31, %v429_v32 }
 0x141   : > { %v431_v34 = vmul.f32 0.5, %v430_v33 }
 0x143   : > { %v432_v35 = vsub.f32 1.5, %v431_v34 }
 0x145   : > { %v433_v37 = vmul.f32 %v761_v31, %v432_v35 }
 0x147   : > { %v437_v38 = vsel %vm436_vm5, %v761_v31, %v433_v37 }
 0x148   : > { %v442_v40 = vmul.f32 %v754_v36, %v437_v38 }
 0x14a   : > { %v444_v42 = vmul.f32 %v443_v39, %v442_v40 }
 0x14c   : > { %v449_v43 = vadd.f32 %v755_v41, %v444_v42 }
 0x14e   : > { %762 = vtanh.f32 %v449_v43 }
 0x154   : > { %v763_v44 = vpop.eup %762 }
 0x155   : > { %v451_v45 = vpack.c.bf16 %v763_v44, %v763_v44 }
 0x157   : > { %670 = vmatmul.msk.bf16.vlgmr.msra.gmra.mxu1 %vm407_vm1, %v451_v45 }
 0x1d4   : > { %v500_v50 = vpop.f32.mrf.mxu1 }
 0x1d5   : > { %v501_v51 = vadd.f32 %v756_v49, %v500_v50 }
 0x1d7   : > { %764 = vtanh.f32 %v501_v51 }
 0x1dc   : > { %v502_v52 = vpop.f32.mrf.mxu1 }
 0x1dd   : > { %v765_v53 = vpop.eup %764 }
 0x1de   : > { %v505_v54 = vpack.c.bf16 %v765_v53, %v765_v53 }
 0x1e0   : > { %687 = vmatmul.msk.bf16.vlgmr.msra.gmra.mxu2 %vm407_vm1, %v505_v54 }
 0x263   : > { %v554_v56 = vpop.f32.mrf.mxu2 }
 0x264   : > { %v555_v57 = vadd.f32 %v757_v55, %v554_v56 }
 0x266   : > { %559 = vst.msk [vmem:[%s366_s15] sm:$0xff] %vm558_vm6, %v555_v57 }
 0x26b   : > { %v556_v58 = vpop.f32.mrf.mxu2 }
 0x26c PF: > { %p20_p3 = scmp.ge.s32.totalorder %s956_s22, 5   ;;  %s1079_s30 = smov %s856_s10 }
 0x26d   : > { %s1080_s10 = smov %s860_s11  ;;  %s1081_s11 = smov %s966_s25 }
 0x26e   : > { %s1082_s12 = smov %s956_s22  ;;  %22 = sbr.rel (!%p20_p3) target bundleno = 4 (0x4), region = 100 }
 0x273   :  { %579 = vsyncpa [#allocation3], 1 }
 0x274   :  { %581 = vsyncpa [#allocation3 + $0x1], 1 }
 0x275   :  { %582 = vsyncpa [#allocation5], 1 }

</bundles_post_ra>
